<compile_context>
chip_gen: v7x
topology: tpu7x:2x2x1
jax: 0.10.0
libtpu: 0.0.40
codegen_flags: <defaults>
</compile_context>

<pallas_src>
import functools
import math

import jax
import jax.numpy as jnp
from jax.experimental import pallas as pl
from jax.experimental.pallas import tpu as pltpu


def _rope3d_kernel(xyz_ref, s_ref, phase_ref, out_ref):
    """One (batch, N-tile) block: xyz (1,TN,3), S (3,F3), phase (1,F3) -> out (1,TN,F3)."""
    xyz = xyz_ref[0]                 # (TN, 3) f32
    s = s_ref[...]                   # (3, F3): row c = div_term on coord-c columns, 0 elsewhere
    phase = phase_ref[...]           # (1, F3): pi/2 on cos (even) columns, 0 on sin (odd) columns

    x = xyz[:, 0:1]                  # (TN, 1)
    y = xyz[:, 1:2]
    z = xyz[:, 2:3]

    # angle[r, j] = XYZ[r, coord(j)] * div_full[j]   (masked-broadcast sum, VPU only)
    angle = x * s[0:1, :] + y * s[1:2, :] + z * s[2:3, :] + phase      # (TN, F3)
    out_ref[0] = jnp.sin(angle).astype(out_ref.dtype)


def _pick_tile_n(n, f3, budget_bytes=8 << 20):
    """Pick the N-tile size: multiple of 8, double-buffered working set under budget."""
    # per-row VMEM (double buffered): output tile F3*4 B + lane-padded (3 -> 128) xyz 512 B
    bytes_per_row = 2 * (f3 * 4 + 128 * 4)
    tn = max(8, min(2048, (budget_bytes // bytes_per_row) // 8 * 8))
    return n if n <= tn else tn


@functools.partial(jax.jit, static_argnums=(1, 2))
def rotary_position_encoding_3d(xyz, feature_dim, out_dtype=jnp.float32):
    """Pallas implementation of RotaryPositionEncoding3D.forward.

    xyz: [B, N, 3] float array.
    returns: [B, N, 3 * (feature_dim // 3)] array of `out_dtype` (default float32).
    """
    B, N, C = xyz.shape
    assert C == 3, "XYZ must be [B, N, 3]"
    D = feature_dim // 3
    assert D % 2 == 0, "feature_dim // 3 must be even to match the torch column layout"
    Dh = D // 2
    F3 = 3 * D

    # Deterministic constants (no learned parameters in this module).
    div_term = jnp.exp(
        jnp.arange(0, D, 2, dtype=jnp.float32) * (-math.log(10000.0) / D)
    )                                                            # (Dh,)
    j = jnp.arange(F3)
    div_full = div_term[(j // 2) % Dh]                           # (F3,) div per output column
    comp = (j // D)[None, :]                                     # (1, F3) coordinate of column j
    S = jnp.where(
        comp == jnp.arange(3)[:, None], div_full[None, :], 0.0
    ).astype(jnp.float32)                                        # (3, F3)
    phase = jnp.where(j % 2 == 0, math.pi / 2, 0.0).astype(jnp.float32).reshape(1, F3)

    TN = _pick_tile_n(N, F3)
    grid = (B, pl.cdiv(N, TN))

    return pl.pallas_call(
        _rope3d_kernel,
        out_shape=jax.ShapeDtypeStruct((B, N, F3), out_dtype),
        grid_spec=pltpu.PrefetchScalarGridSpec(
            num_scalar_prefetch=0,
            grid=grid,
            in_specs=[
                pl.BlockSpec((1, TN, 3), lambda b, n: (b, n, 0)),
                pl.BlockSpec((3, F3), lambda b, n: (0, 0)),
                pl.BlockSpec((1, F3), lambda b, n: (0, 0)),
            ],
            out_specs=pl.BlockSpec((1, TN, F3), lambda b, n: (b, n, 0)),
        ),
        compiler_params=pltpu.CompilerParams(
            dimension_semantics=("parallel", "parallel"),
            vmem_limit_bytes=32 * 1024 * 1024,
        ),
    )(xyz.astype(jnp.float32), S, phase)


def _reference(xyz, feature_dim):
    """Pure-JAX reference mirroring the torch forward (for verification)."""
    B, N, _ = xyz.shape
    D = feature_dim // 3
    x = xyz[..., 0:1]
    y = xyz[..., 1:2]
    z = xyz[..., 2:3]
    div_term = jnp.exp(
        jnp.arange(0, D, 2, dtype=jnp.float32) * (-math.log(10000.0) / D)
    ).reshape(1, 1, -1)
    sinx, cosx = jnp.sin(x * div_term), jnp.cos(x * div_term)
    siny, cosy = jnp.sin(y * div_term), jnp.cos(y * div_term)
    sinz, cosz = jnp.sin(z * div_term), jnp.cos(z * div_term)
    cos_all = jnp.concatenate([cosx, cosy, cosz], axis=-1)
    sin_all = jnp.concatenate([sinx, siny, sinz], axis=-1)
    pc = jnp.stack([cos_all, sin_all], axis=-1)
    return pc.reshape(B, N, -1)


if __name__ == "__main__":
    key = jax.random.PRNGKey(0)
    B, N = 2, 8
    feature_dim = 48  # divisible by 3, D = 16 (even), F3 = 48

    xyz = jax.random.uniform(key, (B, N, 3), dtype=jnp.float32, minval=-2.0, maxval=2.0)

    out = rotary_position_encoding_3d(xyz, feature_dim)
    out = jax.block_until_ready(out)

    ref = _reference(xyz, feature_dim)
    assert out.shape == (B, N, 3 * (feature_dim // 3)), out.shape
    assert jnp.allclose(out, ref, atol=1e-5, rtol=1e-5), "mismatch vs reference"

    print("KERNEL_OK")
</pallas_src>

<mosaic_0001>
module attributes {stable_mosaic.version = 11 : i64} {
  func.func @_rope3d_kernel(%arg0: i32, %arg1: i32, %arg2: memref<1x8x3xf32, #tpu.memory_space<vmem>>, %arg3: memref<3x48xf32, #tpu.memory_space<vmem>>, %arg4: memref<1x48xf32, #tpu.memory_space<vmem>>, %arg5: memref<1x8x48xf32, #tpu.memory_space<vmem>>) attributes {dimension_semantics = [#tpu.dimension_semantics<parallel>, #tpu.dimension_semantics<parallel>], iteration_bounds = array<i64: 2, 1>, scalar_prefetch = 0 : i64, scratch_operands = 0 : i64, tpu.core_type = #tpu.core_type<tc>, window_params = [{transform_indices = @transform_0, window_bounds = array<i64: 1, 8, 3>}, {pipeline_mode = #tpu.pipeline_mode<synchronous>, transform_indices = @transform_1, window_bounds = array<i64: 3, 48>}, {pipeline_mode = #tpu.pipeline_mode<synchronous>, transform_indices = @transform_2, window_bounds = array<i64: 1, 48>}, {transform_indices = @transform_3, window_bounds = array<i64: 1, 8, 48>}]} {
    %c0 = arith.constant 0 : index
    %c0_0 = arith.constant 0 : index
    %c0_1 = arith.constant 0 : index
    %0 = vector.load %arg2[%c0, %c0_0, %c0_1] : memref<1x8x3xf32, #tpu.memory_space<vmem>>, vector<1x8x3xf32>
    %1 = vector.shape_cast %0 : vector<1x8x3xf32> to vector<8x3xf32>
    %c0_2 = arith.constant 0 : index
    %c0_3 = arith.constant 0 : index
    %2 = vector.load %arg3[%c0_2, %c0_3] : memref<3x48xf32, #tpu.memory_space<vmem>>, vector<3x48xf32>
    %c0_4 = arith.constant 0 : index
    %c0_5 = arith.constant 0 : index
    %3 = vector.load %arg4[%c0_4, %c0_5] : memref<1x48xf32, #tpu.memory_space<vmem>>, vector<1x48xf32>
    %4 = vector.extract_strided_slice %1 {offsets = [0, 0], sizes = [8, 1], strides = [1, 1]} : vector<8x3xf32> to vector<8x1xf32>
    %5 = vector.extract_strided_slice %1 {offsets = [0, 1], sizes = [8, 1], strides = [1, 1]} : vector<8x3xf32> to vector<8x1xf32>
    %6 = vector.extract_strided_slice %1 {offsets = [0, 2], sizes = [8, 1], strides = [1, 1]} : vector<8x3xf32> to vector<8x1xf32>
    %7 = vector.extract_strided_slice %2 {offsets = [0, 0], sizes = [1, 48], strides = [1, 1]} : vector<3x48xf32> to vector<1x48xf32>
    %8 = vector.broadcast %4 : vector<8x1xf32> to vector<8x48xf32>
    %9 = vector.broadcast %7 : vector<1x48xf32> to vector<8x48xf32>
    %10 = arith.mulf %8, %9 : vector<8x48xf32>
    %11 = vector.extract_strided_slice %2 {offsets = [1, 0], sizes = [1, 48], strides = [1, 1]} : vector<3x48xf32> to vector<1x48xf32>
    %12 = vector.broadcast %5 : vector<8x1xf32> to vector<8x48xf32>
    %13 = vector.broadcast %11 : vector<1x48xf32> to vector<8x48xf32>
    %14 = arith.mulf %12, %13 : vector<8x48xf32>
    %15 = arith.addf %10, %14 : vector<8x48xf32>
    %16 = vector.extract_strided_slice %2 {offsets = [2, 0], sizes = [1, 48], strides = [1, 1]} : vector<3x48xf32> to vector<1x48xf32>
    %17 = vector.broadcast %6 : vector<8x1xf32> to vector<8x48xf32>
    %18 = vector.broadcast %16 : vector<1x48xf32> to vector<8x48xf32>
    %19 = arith.mulf %17, %18 : vector<8x48xf32>
    %20 = arith.addf %15, %19 : vector<8x48xf32>
    %21 = vector.broadcast %3 : vector<1x48xf32> to vector<8x48xf32>
    %22 = arith.addf %20, %21 : vector<8x48xf32>
    %23 = math.sin %22 : vector<8x48xf32>
    %c0_6 = arith.constant 0 : index
    %c0_7 = arith.constant 0 : index
    %c0_8 = arith.constant 0 : index
    %24 = vector.load %arg5[%c0_6, %c0_7, %c0_8] : memref<1x8x48xf32, #tpu.memory_space<vmem>>, vector<1x8x48xf32>
    %25 = vector.shape_cast %24 : vector<1x8x48xf32> to vector<8x48xf32>
    %26 = vector.shape_cast %23 : vector<8x48xf32> to vector<1x8x48xf32>
    tpu.vector_store %arg5[%c0_6, %c0_7, %c0_8], %26 {strides = array<i32>} : memref<1x8x48xf32, #tpu.memory_space<vmem>>, vector<1x8x48xf32>,
    return
  }
  func.func @transform_0(%arg0: i32, %arg1: i32) -> (i32, i32, i32) {
    %c0_i32 = arith.constant 0 : i32
    %c0_i32_0 = arith.constant 0 : i32
    return %arg0, %arg1, %c0_i32 : i32, i32, i32
  }
  func.func @transform_1(%arg0: i32, %arg1: i32) -> (i32, i32) {
    %c0_i32 = arith.constant 0 : i32
    %c0_i32_0 = arith.constant 0 : i32
    %c0_i32_1 = arith.constant 0 : i32
    return %c0_i32, %c0_i32_0 : i32, i32
  }
  func.func @transform_2(%arg0: i32, %arg1: i32) -> (i32, i32) {
    %c0_i32 = arith.constant 0 : i32
    %c0_i32_0 = arith.constant 0 : i32
    %c0_i32_1 = arith.constant 0 : i32
    return %c0_i32, %c0_i32_0 : i32, i32
  }
  func.func @transform_3(%arg0: i32, %arg1: i32) -> (i32, i32, i32) {
    %c0_i32 = arith.constant 0 : i32
    %c0_i32_0 = arith.constant 0 : i32
    return %arg0, %arg1, %c0_i32 : i32, i32, i32
  }
}

</mosaic_0001>

<bundles_post_ra>
// kernel: rotary_position_encoding_3d.1
= control target key start
LH: loop header
LB: loop body
LE: loop exit
PB: predicated region body
PF: predicated region fallthrough
CT: control target
= control target key end

     0   :  { %8 = vsyncpa [#allocation3], 0  ;;  %s764_s0 = inlined_call_operand.vmem [shape: f32[2,8,3], index: 0, kind: input, shape index: {}]   ;;  %s765_s1 = inlined_call_operand.vmem [shape: f32[3,48], index: 1, kind: input, shape index: {}]   ;;  %s766_s2 = inlined_call_operand.vmem [shape: f32[1,48], index: 2, kind: input, shape index: {}]   ;;  %s767_s3 = inlined_call_operand.hbm [shape: f32[2,8,48], index: 3, kind: output, shape index: {}]  }
   0x1   :  { %10 = vsyncpa [#allocation3 + $0x1], 0  ;;  %s625_s12 = smov 0   ;;  %s627_s13 = smov 0  }
   0x2   :  { %s629_s14 = smov 0   ;;  %s631_s15 = smov 0  }
   0x3   :  { %s633_s16 = smov 0   ;;  %s635_s17 = smov 0  }
   0x4 LB: > { %s423_s18 = sadd.s32 4294967295, %s593_s17   ;;  %s424_s19 = sadd.s32 4294967294, %s593_s17   ;;  %s593_s17 = sphi %s635_s17, %s16_s17   ;;  %s589_s16 = sphi %s633_s16, %s774_s16   ;;  %s585_s15 = sphi %s631_s15, %s773_s15   ;;  %s581_s14 = sphi %s629_s14, %s772_s14   ;;  %s577_s13 = sphi %s627_s13, %s771_s13   ;;  %s573_s12 = sphi %s625_s12, %s770_s12  }
   0x5   : > { %s28_s20 = sadd.s32 1, %s589_s16  ;;  %s107_s21 = sadd.s32 1, %s581_s14 }
   0x6   : > { %p30_p0 = scmp.ge.s32.totalorder %s28_s20, 2  ;;  %p117_p1 = scmp.ne.s32.totalorder %s581_s14, %s577_s13 }
   0x7   : > { %p118_p2 = scmp.eq.s32.totalorder %s423_s18, 1  ;;  %p123_p3 = scmp.ne.s32.totalorder %s577_s13, %s573_s12 }
   0x8   : > { %s776_s20 = smov (%p30_p0, %s28_s20), 0  ;;  %p124_p5 = scmp.eq.s32.totalorder %s424_s19, 1 }
   0x9   : > { %p665_p4 = por %p118_p2, %p117_p1  ;;  %s102_s23 = ssub.s32 %s589_s16, %s776_s20 }
   0xa   : > { %p427_p6 = scmp.ge.s32.totalorder %s593_s17, 1  ;;  %p105_p7 = scmp.eq.s32.totalorder %s102_s23, 0 }
   0xb   : > { %p672_p8 = por %p124_p5, %p123_p3  ;;  %p158_p9 = scmp.lt.s32.totalorder %s593_s17, 3 }
   0xc   : > { %s678_s25 = scalar_select %p105_p7, %s581_s14, %s107_s21  }
   0xd   : > { %p159_p10 = pnand %p427_p6, %p158_p9 }
   0xe   : > { %p184_p11 = scmp.lt.s32.totalorder (!%p159_p10), %s585_s15, 1  ;;  %v595_v0 = vmov (!%p159_p10), 0   ;;  %v596_v1 = vmov (!%p159_p10), 2   ;;  %v597_v3 = vmov (!%p159_p10), 1   ;;  %v199_v4 = vlaneseq (!%p159_p10)  ;;  %v192_v9 = vld [vmem:[%s765_s1] sm:$0x7] (!%p159_p10) }
   0xf   : > { %162 = sbr.rel (%p159_p10) target bundleno = 261 (0x105), region = 32  ;;  %507 = vset.pattern.permute.xlu0 (!%p159_p10), %v595_v0  ;;  %509 = vset.pattern.permute.xlu1 (!%p159_p10), %v596_v1  ;;  %v430_v20 = vld [vmem:[%s766_s2] ss:$0 sm:$0xff] (!%p159_p10)  ;;  %v598_v33 = vmov (!%p159_p10), 683565275   ;;  %s181_s8 = sand.u32 (!%p159_p10), 1, %s577_s13  }
  0x10   : > { %v200_v5 = vshrl.u32 (!%p159_p10), %v199_v4, 7  ;;  %v599_v35 = vmov (!%p159_p10), 2475754826   ;;  %v600_v38 = vmov (!%p159_p10), 2131351028   ;;  %s428_s9 = sshll.u32 (!%p159_p10), %s181_s8, 3 }
  0x11   : > { %v601_v41 = vmov (!%p159_p10), 2102212464   ;;  %v602_v44 = vmov (!%p159_p10), 920167782   ;;  %v603_v47 = vmov (!%p159_p10), 1326507024  }
  0x12   : > { %v201_v6 = vsub.s32 (!%p159_p10), 0, %v200_v5  ;;  %v210_v7 = vsub.s32 (!%p159_p10), 1, %v200_v5  ;;  %v220_v8 = vsub.s32 (!%p159_p10), 2, %v200_v5  ;;  %s436_s10 = sshll.u32 (!%p159_p10), %s585_s15, 7  ;;  %s183_s11 = scalar_lea.vmem (!%p159_p10), [#allocation2], %s428_s9  ;;  %vm335_vm12 = vcmask (!%p159_p10), 392192  }
  0x13   : > { %s352_s18 = sshll.u32 (!%p159_p10), %s183_s11, 4  ;;  %s717_s23 = scalar_lea.hbm (!%p159_p10), %s767_s3, %s436_s10  ;;  %s719_s18 = int_to_ptr.vmem [resolvable:$true] %s352_s18 }
  0x14   : > { %v202_v11 = vrot.slane (!%p159_p10), %v192_v9, %v201_v6  ;;  %v211_v12 = vrot.slane (!%p159_p10), %v192_v9, %v210_v7  ;;  %v221_v13 = vrot.slane (!%p159_p10), %v192_v9, %v220_v8 }
  0x16   : > { %s185_s26 = scalar_select %p184_p11, %s585_s15, 1 }
  0x17   : > { %s338_s15 = scalar_lea.sflag [#allocation3], %s181_s8 }
  0x18   : > { %s429_s27 = sshll.u32 %s185_s26, 3  ;;  %s515_s26 = scalar_lea.vmem %s719_s18, 128 }
  0x19   : > { %s190_s30 = scalar_lea.vmem %s764_s0, %s429_s27  ;;  %p516_p12 = scmp.ne.s32.totalorder %s719_s18, %s515_s26 }
  0x1a   : > { %v191_v2 = vld [vmem:[%s190_s30] sm:$0xff]  ;;  %s604_s27 = smov [#allocation2]  }
  0x1b   : > { %196 = vperm.xlu0 %507, %v191_v2   ;;  %215 = vperm.xlu1 %509, %v191_v2   ;;  %p517_p13 = pnand %p516_p12, %p665_p4  ;;  %s519_s28 = sshll.u32 %s604_s27, 4  ;;  %s520_s28 = int_to_ptr.vmem [resolvable:$false] %s519_s28 }
  0x1c   : > { %s521_s29 = scalar_lea.vmem %s520_s28, 256  ;;  %p522_p1 = scmp.lt.s32.totalorder %s719_s18, %s520_s28 }
  0x1d   : > { %p518_p0 = pneg %p517_p13  ;;  %p523_p2 = scmp.lt.s32.totalorder %s521_s29, %s515_s26 }
  0x1f   : > { %508 = vset.pattern.permute.xlu0 %v597_v3  ;;  %p524_p3 = por %p523_p2, %p522_p1 }
  0x20   : > { %205 = vperm.xlu0 %508, %v191_v2  }
  0x21   : > { %p525_p5 = pnand %p524_p3, %p518_p0 }
  0x24   : > { %510 = vset.pattern.permute.xlu0 %v596_v1 }
  0x9a   : > { %v197_v10 = vpop.permute.xlu0 %196  ;;  %v216_v14 = vpop.permute.xlu1 %215 }
  0x9b   : > { %v203_v16 = vmul.f32 %v202_v11, %v197_v10  ;;  %v222_v18 = vmul.f32 %v221_v13, %v216_v14 }
  0x9f   : > { %v206_v15 = vpop.permute.xlu0 %205 }
  0xa0   : > { %v212_v17 = vmul.f32 %v211_v12, %v206_v15 }
  0xa2   : > { %v213_v19 = vadd.f32 %v212_v17, %v203_v16 }
  0xa4   : > { %v223_v21 = vadd.f32 %v222_v18, %v213_v19 }
  0xa6   : > { %v691_v22 = vadd.f32 %v430_v20, %v223_v21 }
  0xa8   : > { %v234_v23 = vand.u32 2139095040, %v691_v22  ;;  %v231_v27 = vand.u32 2147483647, %v691_v22  ;;  %vm233_vm7 = vcmp.lt.s32.totalorder %v691_v22, 0  ;;  %vm323_vm13 = vweird.f32 %v691_v22 }
  0xaa   : > { %v235_v24 = vshrl.u32 %v234_v23, 23  ;;  %v238_v30 = vand.u32 8388607, %v231_v27  ;;  %vm232_vm8 = vcmp.le.f32.partialorder %v231_v27, 0.7853982 }
  0xac   : > { %v431_v25 = vadd.s32 4294967169, %v235_v24  ;;  %v239_v49 = vor.u32 8388608, %v238_v30 }
  0xae   : > { %v241_v26 = vadd.s32 1, %v431_v25  ;;  %v279_v63 = vshll.u32 %v239_v49, 8 }
  0xb0   : > { %vm242_vm0 = vcmp.gt.s32.totalorder %v241_v26, 0 }
  0xb1   : > { %v243_v28 = vsel %vm242_vm0, %v241_v26, 0 }
  0xb2   : > { %v245_v29 = vand.u32 31, %v243_v28  ;;  %v244_v32 = vshrl.u32 %v243_v28, 5 }
  0xb4   : > { %v246_v31 = vsub.s32 32, %v245_v29  ;;  %v248_v34 = vshll.u32 %v598_v33, %v245_v29  ;;  %v251_v36 = vshll.u32 %v599_v35, %v245_v29  ;;  %v254_v40 = vshll.u32 %v600_v38, %v245_v29 }
  0xb5   : > { %v257_v43 = vshll.u32 %v601_v41, %v245_v29  ;;  %v260_v46 = vshll.u32 %v602_v44, %v245_v29  ;;  %vm263_vm1 = vcmp.lt.s32.totalorder %v244_v32, 1  ;;  %vm266_vm2 = vcmp.lt.s32.totalorder %v244_v32, 4 }
  0xb6   : > { %v249_v37 = vshrl.u32 %v599_v35, %v246_v31  ;;  %v252_v39 = vshrl.u32 %v600_v38, %v246_v31  ;;  %v255_v42 = vshrl.u32 %v601_v41, %v246_v31  ;;  %v258_v45 = vshrl.u32 %v602_v44, %v246_v31 }
  0xb7   : > { %v261_v48 = vshrl.u32 %v603_v47, %v246_v31  ;;  %v247_v58 = vshrl.u32 %v598_v33, %v246_v31  ;;  %vm265_vm3 = vcmp.lt.s32.totalorder %v244_v32, 3  ;;  %vm264_vm4 = vcmp.lt.s32.totalorder %v244_v32, 2 }
  0xb8   : > { %v250_v50 = vor.u32 %v249_v37, %v248_v34  ;;  %v253_v51 = vor.u32 %v252_v39, %v251_v36  ;;  %v256_v52 = vor.u32 %v255_v42, %v254_v40  ;;  %v259_v53 = vor.u32 %v258_v45, %v257_v43 }
  0xb9   : > { %v262_v54 = vor.u32 %v261_v48, %v260_v46 }
  0xba   : > { %v268_v55 = vsel %vm266_vm2, %v256_v52, 2102212464  ;;  %v271_v56 = vsel %vm263_vm1, %v250_v50, %v253_v51  ;;  %v275_v57 = vsel %vm263_vm1, %v253_v51, %v256_v52  ;;  %v272_v59 = vsel %vm266_vm2, %v259_v53, 920167782 }
  0xbb   : > { %v276_v60 = vsel %vm266_vm2, %v262_v54, 1326507024  ;;  %v273_v61 = vsel %vm265_vm3, %v256_v52, %v272_v59  ;;  %v267_v0 = vsel %vm263_vm1, %v247_v58, %v250_v50  ;;  %v269_v1 = vsel %vm265_vm3, %v253_v51, %v268_v55 }
  0xbc   : > { %v277_v62 = vsel %vm265_vm3, %v259_v53, %v276_v60  ;;  %v274_v2 = vsel %vm264_vm4, %v271_v56, %v273_v61  ;;  %v270_v8 = vsel %vm264_vm4, %v267_v0, %v269_v1 }
  0xbd   : > { %v278_v3 = vsel %vm264_vm4, %v275_v57, %v277_v62  ;;  %v700_v6 = vmul.u32.u64.low %v279_v63, %v274_v2  ;;  %v701_v7 = vmul.u32.u64.high %v279_v63, %v274_v2, %v700_v6  ;;  %v286_v10 = vmul.u32 %v279_v63, %v270_v8 }
  0xbe   : > { %v697_v4 = vmul.u32.u64.low %v279_v63, %v278_v3  ;;  %v698_v5 = vmul.u32.u64.high %v279_v63, %v278_v3, %v697_v4 }
  0xbf   : > { %v289_v9 = vadd.s32 1, %v701_v7 }
  0xc0   : > { %vm288_vm5 = vc.u32 %v698_v5, %v700_v6  ;;  %v287_v23 = vadd.s32 %v700_v6, %v698_v5 }
  0xc1   : > { %v290_v11 = vsel %vm288_vm5, %v289_v9, %v701_v7 }
  0xc2   : > { %v291_v12 = vadd.s32 %v290_v11, %v286_v10 }
  0xc4   : > { %v292_v13 = vadd.s32 536870912, %v291_v12 }
  0xc6   : > { %v293_v14 = vshrl.u32 %v292_v13, 30 }
  0xc8   : > { %v294_v15 = vshll.u32 %v293_v14, 30  ;;  %v317_v36 = vsub.s32 4, %v293_v14 }
  0xca   : > { %v295_v16 = vsub.s32 %v291_v12, %v294_v15  ;;  %v318_v39 = vsel %vm233_vm7, %v317_v36, %v293_v14 }
  0xcb   : > { %v320_v41 = vsel %vm232_vm8, 0, %v318_v39 }
  0xcc   : > { %v297_v17 = vsub.s32 0, %v295_v16  ;;  %v324_v42 = vadd.s32 3, %v320_v41 }
  0xce   : > { %v432_v18 = vmin.u32 %v297_v17, %v295_v16  ;;  %v325_v43 = vand.u32 3, %v324_v42 }
  0xd0   : > { %v299_v19 = vclz %v432_v18  ;;  %vm330_vm9 = vcmp.eq.s32.totalorder %v325_v43, 2  ;;  %vm327_vm10 = vcmp.eq.s32.totalorder %v325_v43, 0  ;;  %vm326_vm11 = vcmp.lt.s32.totalorder %v325_v43, 2 }
  0xd2   : > { %v433_v20 = vadd.s32 4294967294, %v299_v19 }
  0xd4   : > { %vm434_vm6 = vcmp.lt.s32.totalorder %v433_v20, 0 }
  0xd5   : > { %v302_v21 = vsel %vm434_vm6, 0, %v433_v20 }
  0xd6   : > { %v303_v24 = vsub.s32 32, %v302_v21  ;;  %v307_v25 = vsub.s32 4294967266, %v302_v21  ;;  %v304_v26 = vshll.u32 %v295_v16, %v302_v21 }
  0xd8   : > { %v305_v28 = vshrl.u32 %v287_v23, %v303_v24  ;;  %v308_v29 = vadd.s32 127, %v307_v25 }
  0xda   : > { %v306_v30 = vor.u32 %v305_v28, %v304_v26  ;;  %v309_v31 = vshll.u32 %v308_v29, 23 }
  0xdc   : > { %v310_v32 = vor.u32 4788187, %v309_v31  ;;  %v313_v34 = vcvt.s32.f32 %v306_v30 }
  0xde   : > { %v311_v33 = vand.u32 2147483647, %v310_v32 }
  0xe0   : > { %v314_v35 = vmul.f32 %v313_v34, %v311_v33 }
  0xe2   : > { %v315_v37 = vxor.u32 2147483648, %v314_v35 }
  0xe4   : > { %v316_v38 = vsel %vm233_vm7, %v315_v37, %v314_v35 }
  0xe5   : > { %v319_v40 = vsel %vm232_vm8, %v691_v22, %v316_v38 }
  0xe6   : > { %511 = vcosq.f32 %v319_v40 }
  0xe7   : > { %513 = vsinq.f32 %v319_v40 }
  0xf0   : > { %v512_v44 = vpop.eup %511 }
  0xf1   : > { %v514_v45 = vpop.eup %513  ;;  %v331_v46 = vxor.u32 2147483648, %v512_v44 }
  0xf2   : > { %v328_v47 = vxor.u32 2147483648, %v514_v45 }
  0xf3   : > { %v332_v27 = vsel %vm330_vm9, %v331_v46, %v514_v45 }
  0xf4   : > { %v329_v48 = vsel %vm327_vm10, %v512_v44, %v328_v47 }
  0xf5   : > { %v333_v49 = vsel %vm326_vm11, %v329_v48, %v332_v27 }
  0xf6   : > { %v334_v50 = vsel %vm323_vm13, nan, %v333_v49 }
  0xf7   : > { %336 = vst.msk [vmem:[%s183_s11] sm:$0xff] %vm335_vm12, %v334_v50 }
  0xf8   : > { %528 = shalt.err (!%p525_p5)
}
  0xf9   : > { %s529_s30 = scalar_lea.hbm %s717_s23, 128  ;;  %s533_s6 = scalar_lea.hbm %s767_s3, 256 }
  0xfa   : > { %p530_p6 = scmp.ne.s32.totalorder %s717_s23, %s529_s30  ;;  %p534_p10 = scmp.lt.u32.totalorder %s717_s23, %s767_s3 }
  0xfb   : > { %p535_p11 = scmp.lt.u32.totalorder %s533_s6, %s529_s30  ;;  %p537_p13 = scmp.lt.u32.totalorder %s529_s30, %s717_s23 }
  0xfc   : > { %p531_p7 = pnand %p530_p6, %p665_p4 }
  0xfd   : > { %p536_p12 = por %p535_p11, %p534_p10 }
  0xfe   : > { %p532_p9 = pneg %p531_p7 }
  0xff   : > { %p538_p0 = por %p537_p13, %p536_p12 }
 0x101   : > { %p539_p1 = pnand %p538_p0, %p532_p9 }
 0x103   : > { %542 = shalt.err (!%p539_p1)
}
 0x104   : > { %443 = dma.vmem_to_hbm [thread:$0]  (%p665_p4), %s719_s18, 128, %s717_s23, %s338_s15  }
 0x105 PF: > { %p449_p2 = scmp.ge.s32.totalorder %s593_s17, 2  ;;  %s364_s9 = sand.u32 1, %s573_s12  }
 0x106   : > { %s365_s10 = scalar_lea.sflag [#allocation3], %s364_s9 }
 0x107   : > { %p446_p3 = pnand %p449_p2, %p672_p8 }
 0x109   : > { %568 = dma.done.wait (!%p446_p3), %s365_s10, 128  }
 0x10a   : > { %570 = vsyncadd (!%p446_p3), %s365_s10, 4294967168  ;;  %s16_s17 = sadd.s32 1, %s593_s17   ;;  %s770_s12 = smov %s577_s13 }
 0x10b   : > { %p13_p5 = scmp.ge.s32.totalorder %s16_s17, 4   ;;  %s771_s13 = smov %s581_s14 }
 0x10c   : > { %s772_s14 = smov %s678_s25  ;;  %s773_s15 = smov %s589_s16 }
 0x10d   : > { %s774_s16 = smov %s776_s20  ;;  %15 = sbr.rel (!%p13_p5) target bundleno = 4 (0x4), region = 67 }
 0x114   :  { %370 = vsyncpa [#allocation3], 1 }
 0x115   :  { %372 = vsyncpa [#allocation3 + $0x1], 1 }

</bundles_post_ra>
